<compile_context>
chip_gen: v5e
topology: v5e:2x2
jax: 0.10.0
libtpu: 0.0.40
codegen_flags: <defaults>
</compile_context>

<pallas_src>
import jax
import jax.numpy as jnp
from jax.experimental import pallas as pl
from jax.experimental.pallas import tpu as pltpu

LANE = 128


# --------------------------------------------------------------------------- #
# Kernel (shared by both SAGEConv layers)
# --------------------------------------------------------------------------- #
def sage_layer_kernel(a_ref, dinv_ref, xn_ref, xr_ref, wl_ref, wr_ref, b_ref,
                      o_ref, acc_ref):
    """One SAGEConv layer (mean aggregation) + ReLU.

    grid = (row_tiles, k_tiles).  acc_ref accumulates the un-normalized
    neighbor sum A[i, :] @ x over k tiles; on the last k step the sum is
    scaled by deg_inv and fed through two MXU dots (lin_l on the aggregate,
    lin_r on the root features), bias add and ReLU - all lane-dense (128).
    """
    k = pl.program_id(1)

    @pl.when(k == 0)
    def _():
        acc_ref[...] = jnp.zeros_like(acc_ref)

    # Un-normalized neighbor sum: bf16 0/1 A tile x bf16 features, f32 acc.
    acc_ref[...] += jnp.dot(a_ref[...], xn_ref[...],
                            preferred_element_type=jnp.float32)

    @pl.when(k == pl.num_programs(1) - 1)
    def _():
        # Mean normalization in-kernel (f32 deg_inv, one VPU multiply).
        agg = acc_ref[...] * dinv_ref[...]
        # Two MXU pushes into the same f32 result (no lane-axis concat).
        h = jnp.dot(agg.astype(wl_ref.dtype), wl_ref[...],
                    preferred_element_type=jnp.float32)
        h += jnp.dot(xr_ref[...], wr_ref[...],
                     preferred_element_type=jnp.float32)
        h += b_ref[...]
        o_ref[...] = jnp.maximum(h, 0.0).astype(o_ref.dtype)


# --------------------------------------------------------------------------- #
# Wrapper
# --------------------------------------------------------------------------- #
def _round_up(x, m):
    return (x + m - 1) // m * m


def _pad2(a, rows, cols):
    return jnp.pad(a, ((0, rows - a.shape[0]), (0, cols - a.shape[1])))


def _sage_layer(a_bf, dinv, x_bf, wl, wr, b, *, tm, out_dtype):
    """relu(SAGEConv(x)) with lane-dense (128-padded) feature dims."""
    npad, din_p = x_bf.shape
    hid_p = wl.shape[1]
    grid = (npad // tm, npad // tm)

    def a_map(i, k): return (i, k)        # A tile
    def col_map(i, k): return (k, 0)      # neighbor features (follow k)
    def row_map(i, k): return (i, 0)      # root features / deg_inv / output
    def const_map(i, k): return (0, 0)    # weights / bias

    out_bytes = jnp.dtype(out_dtype).itemsize
    cost = pl.CostEstimate(
        flops=2 * npad * npad * din_p + 2 * 2 * npad * din_p * hid_p,
        transcendentals=0,
        bytes_accessed=(npad * npad * 2                      # A (bf16), streamed once
                        + (npad // tm) * npad * din_p * 2    # neighbor tiles per row tile
                        + npad * din_p * 2 + npad * 4        # root features + deg_inv
                        + 2 * 2 * din_p * hid_p + 4 * hid_p  # weights + bias
                        + npad * hid_p * out_bytes))         # output

    return pl.pallas_call(
        sage_layer_kernel,
        out_shape=jax.ShapeDtypeStruct((npad, hid_p), out_dtype),
        grid_spec=pltpu.PrefetchScalarGridSpec(
            num_scalar_prefetch=0,
            grid=grid,
            in_specs=[
                pl.BlockSpec((tm, tm), a_map),            # A tile (bf16 0/1 counts)
                pl.BlockSpec((tm, 1), row_map),           # deg_inv (f32)
                pl.BlockSpec((tm, din_p), col_map),       # neighbor features
                pl.BlockSpec((tm, din_p), row_map),       # root features
                pl.BlockSpec((din_p, hid_p), const_map),  # wl (lin_l)
                pl.BlockSpec((din_p, hid_p), const_map),  # wr (lin_r)
                pl.BlockSpec((1, hid_p), const_map),      # bias (f32)
            ],
            out_specs=pl.BlockSpec((tm, hid_p), row_map),
            scratch_shapes=[pltpu.VMEM((tm, din_p), jnp.float32)],
        ),
        compiler_params=pltpu.CompilerParams(
            dimension_semantics=("parallel", "arbitrary"),
            vmem_limit_bytes=32 * 1024 * 1024),
        cost_estimate=cost,
    )(a_bf, dinv, x_bf, x_bf, wl, wr, b)


def gqnn_forward(x, edge_index, params, *, tile=1024):
    """x: [N, Din] f32, edge_index: [2, E] int32 (row0 = src, row1 = dst)."""
    n, din = x.shape
    hid = params["wl1"].shape[1]
    din_p = _round_up(din, LANE)
    hid_p = _round_up(hid, LANE)

    # Raw adjacency counts at targets (PyG 'mean' aggr); normalization happens
    # inside the kernel via f32 deg_inv, so no O(N^2) f32 divide in the wrapper
    # and A stays exactly representable in bf16.
    # TODO(synk): replace the dense O(N^2) A stream with a sparse O(E)
    # scalar-prefetch gather / segment-sum aggregation for realistic graphs.
    src, dst = edge_index[0], edge_index[1]
    a = jnp.zeros((n, n), jnp.float32).at[dst, src].add(1.0)
    deg = a.sum(axis=1, keepdims=True)
    dinv = jnp.where(deg > 0, 1.0 / jnp.maximum(deg, 1.0), 0.0)

    # Tile / pad the node dimension (16-sublane multiple for bf16 tiles).
    # NOTE(v7x): for large graphs npad // tm >= 2 so the "parallel" row axis
    # shards across both TensorCores; tm <= 1024 keeps well under the 64 MiB
    # physical VMEM (v7x) and the 16 MiB default scoped VMEM raise on v5e.
    tm = min(tile, _round_up(n, 16))
    npad = _round_up(n, tm)

    a = _pad2(a, npad, npad)
    x = _pad2(x, npad, din_p)
    dinv = _pad2(dinv, npad, 1).astype(jnp.float32)

    # bf16 MXU operands; f32 accumulation / normalization / bias / ReLU.
    # TODO(synk): on v7x, stream A and activations in fp8 to halve HBM traffic.
    a_bf = a.astype(jnp.bfloat16)
    x_bf = x.astype(jnp.bfloat16)
    wl1 = _pad2(params["wl1"], din_p, hid_p).astype(jnp.bfloat16)
    wr1 = _pad2(params["wr1"], din_p, hid_p).astype(jnp.bfloat16)
    b1 = _pad2(params["b1"], 1, hid_p).astype(jnp.float32)
    wl2 = _pad2(params["wl2"], hid_p, hid_p).astype(jnp.bfloat16)
    wr2 = _pad2(params["wr2"], hid_p, hid_p).astype(jnp.bfloat16)
    b2 = _pad2(params["b2"], 1, hid_p).astype(jnp.float32)

    # Layer 1: h1 = relu(SAGE1(x))          (lane-dense bf16 output)
    h1 = _sage_layer(a_bf, dinv, x_bf, wl1, wr1, b1, tm=tm,
                     out_dtype=jnp.bfloat16)
    # Layer 2: h2 = relu(SAGE2(h1))         (lane-dense f32 output)
    h2 = _sage_layer(a_bf, dinv, h1, wl2, wr2, b2, tm=tm,
                     out_dtype=jnp.float32)

    # Dual-output heads on lane-dense h2: tiny hid->1 matmuls + sigmoid in XLA
    # (negligible FLOPs; avoids a 2-lane masked-store output tile in-kernel).
    h2 = h2[:n, :hid]
    preds = h2 @ params["wp"] + params["bp"]
    diffs = jax.nn.sigmoid(h2 @ params["wd"] + params["bd"])
    return preds - diffs, preds + diffs


# --------------------------------------------------------------------------- #
# Reference + params
# --------------------------------------------------------------------------- #
def gqnn_reference(x, edge_index, params):
    """Pure-JAX f32 reference of the same forward pass."""
    n = x.shape[0]
    src, dst = edge_index[0], edge_index[1]
    a = jnp.zeros((n, n), jnp.float32).at[dst, src].add(1.0)
    deg = a.sum(axis=1, keepdims=True)
    a = jnp.where(deg > 0, a / jnp.maximum(deg, 1.0), 0.0)

    h1 = jax.nn.relu(a @ x @ params["wl1"] + x @ params["wr1"] + params["b1"])
    h2 = jax.nn.relu(a @ h1 @ params["wl2"] + h1 @ params["wr2"] + params["b2"])
    preds = h2 @ params["wp"] + params["bp"]
    diffs = jax.nn.sigmoid(h2 @ params["wd"] + params["bd"])
    return preds - diffs, preds + diffs


def init_params(key, in_dim, hidden_dim):
    ks = jax.random.split(key, 10)

    def lin(k, din, dout, fan_in):
        s = (1.0 / fan_in) ** 0.5
        return jax.random.uniform(k, (din, dout), jnp.float32, -s, s)

    return {
        # SAGEConv1: lin_l (bias) on aggregated, lin_r (no bias) on root
        "wl1": lin(ks[0], in_dim, hidden_dim, in_dim),
        "wr1": lin(ks[1], in_dim, hidden_dim, in_dim),
        "b1": lin(ks[2], 1, hidden_dim, in_dim),
        # SAGEConv2
        "wl2": lin(ks[3], hidden_dim, hidden_dim, hidden_dim),
        "wr2": lin(ks[4], hidden_dim, hidden_dim, hidden_dim),
        "b2": lin(ks[5], 1, hidden_dim, hidden_dim),
        # fc_pred / fc_diff
        "wp": lin(ks[6], hidden_dim, 1, hidden_dim),
        "bp": lin(ks[7], 1, 1, hidden_dim),
        "wd": lin(ks[8], hidden_dim, 1, hidden_dim),
        "bd": lin(ks[9], 1, 1, hidden_dim),
    }


if __name__ == "__main__":
    N, IN_DIM, HIDDEN = 16, 8, 32
    key = jax.random.PRNGKey(0)
    kx, kp = jax.random.split(key)

    x = jax.random.normal(kx, (N, IN_DIM), jnp.float32)
    # Simple deterministic ring graph (bidirectional edges).
    idx = jnp.arange(N, dtype=jnp.int32)
    src = jnp.concatenate([idx, (idx + 1) % N])
    dst = jnp.concatenate([(idx + 1) % N, idx])
    edge_index = jnp.stack([src, dst])          # [2, 2N]

    params = init_params(kp, IN_DIM, HIDDEN)

    pred_low, pred_upper = gqnn_forward(x, edge_index, params)
    jax.block_until_ready((pred_low, pred_upper))

    assert pred_low.shape == (N, 1) and pred_upper.shape == (N, 1)
    assert bool(jnp.all(pred_upper >= pred_low))    # sigmoid margin is positive

    # Check against the f32 reference (bf16 MXU operands -> loose tolerance).
    ref_low, ref_up = gqnn_reference(x, edge_index, params)
    assert bool(jnp.allclose(pred_low, ref_low, atol=0.1, rtol=0.1))
    assert bool(jnp.allclose(pred_upper, ref_up, atol=0.1, rtol=0.1))

    print("KERNEL_OK")
</pallas_src>

<mosaic_0001>
module attributes {stable_mosaic.version = 11 : i64} {
  func.func @sage_layer_kernel(%arg0: i32, %arg1: i32, %arg2: memref<16x16xbf16, #tpu.memory_space<vmem>>, %arg3: memref<16x1xf32, #tpu.memory_space<vmem>>, %arg4: memref<16x128xbf16, #tpu.memory_space<vmem>>, %arg5: memref<16x128xbf16, #tpu.memory_space<vmem>>, %arg6: memref<128x128xbf16, #tpu.memory_space<vmem>>, %arg7: memref<128x128xbf16, #tpu.memory_space<vmem>>, %arg8: memref<1x128xf32, #tpu.memory_space<vmem>>, %arg9: memref<16x128xbf16, #tpu.memory_space<vmem>>, %arg10: memref<16x128xf32, #tpu.memory_space<vmem>>) attributes {dimension_semantics = [#tpu.dimension_semantics<parallel>, #tpu.dimension_semantics<arbitrary>], iteration_bounds = array<i64: 1, 1>, scalar_prefetch = 0 : i64, scratch_operands = 1 : i64, tpu.core_type = #tpu.core_type<tc>, window_params = [{transform_indices = @transform_0, window_bounds = array<i64: 16, 16>}, {transform_indices = @transform_1, window_bounds = array<i64: 16, 1>}, {transform_indices = @transform_2, window_bounds = array<i64: 16, 128>}, {transform_indices = @transform_3, window_bounds = array<i64: 16, 128>}, {pipeline_mode = #tpu.pipeline_mode<synchronous>, transform_indices = @transform_4, window_bounds = array<i64: 128, 128>}, {pipeline_mode = #tpu.pipeline_mode<synchronous>, transform_indices = @transform_5, window_bounds = array<i64: 128, 128>}, {pipeline_mode = #tpu.pipeline_mode<synchronous>, transform_indices = @transform_6, window_bounds = array<i64: 1, 128>}, {transform_indices = @transform_7, window_bounds = array<i64: 16, 128>}]} {
    %c0_i32 = arith.constant 0 : i32
    %0 = arith.cmpi eq, %arg1, %c0_i32 : i32
    %1 = arith.extui %0 : i1 to i32
    %c0_i32_0 = arith.constant 0 : i32
    %2 = arith.cmpi ne, %1, %c0_i32_0 : i32
    scf.if %2 {
      %cst_10 = arith.constant 0.000000e+00 : f32
      %12 = vector.broadcast %cst_10 : f32 to vector<16x128xf32>
      %c0_11 = arith.constant 0 : index
      %c0_12 = arith.constant 0 : index
      %13 = vector.load %arg10[%c0_11, %c0_12] : memref<16x128xf32, #tpu.memory_space<vmem>>, vector<16x128xf32>
      tpu.vector_store %arg10[%c0_11, %c0_12], %12 {strides = array<i32>} : memref<16x128xf32, #tpu.memory_space<vmem>>, vector<16x128xf32>,
    } else {
    }
    %c0 = arith.constant 0 : index
    %c0_1 = arith.constant 0 : index
    %3 = vector.load %arg10[%c0, %c0_1] : memref<16x128xf32, #tpu.memory_space<vmem>>, vector<16x128xf32>
    %c0_2 = arith.constant 0 : index
    %c0_3 = arith.constant 0 : index
    %4 = vector.load %arg2[%c0_2, %c0_3] : memref<16x16xbf16, #tpu.memory_space<vmem>>, vector<16x16xbf16>
    %c0_4 = arith.constant 0 : index
    %c0_5 = arith.constant 0 : index
    %5 = vector.load %arg4[%c0_4, %c0_5] : memref<16x128xbf16, #tpu.memory_space<vmem>>, vector<16x128xbf16>
    %cst = arith.constant dense<0.000000e+00> : vector<16x128xf32>
    %6 = tpu.matmul %4, %5, %cst {dimension_numbers = #tpu.dot_dimension_numbers<[1], [0], [0], [1], [0, 0, 1, 1], [], []>} : vector<16x16xbf16>, vector<16x128xbf16>, vector<16x128xf32> -> vector<16x128xf32>
    %7 = arith.addf %3, %6 : vector<16x128xf32>
    %c0_6 = arith.constant 0 : index
    %c0_7 = arith.constant 0 : index
    %8 = vector.load %arg10[%c0_6, %c0_7] : memref<16x128xf32, #tpu.memory_space<vmem>>, vector<16x128xf32>
    tpu.vector_store %arg10[%c0_6, %c0_7], %7 {strides = array<i32>} : memref<16x128xf32, #tpu.memory_space<vmem>>, vector<16x128xf32>,
    %c0_i32_8 = arith.constant 0 : i32
    %9 = arith.cmpi eq, %arg1, %c0_i32_8 : i32
    %10 = arith.extui %9 : i1 to i32
    %c0_i32_9 = arith.constant 0 : i32
    %11 = arith.cmpi ne, %10, %c0_i32_9 : i32
    scf.if %11 {
      %c0_10 = arith.constant 0 : index
      %c0_11 = arith.constant 0 : index
      %12 = vector.load %arg10[%c0_10, %c0_11] : memref<16x128xf32, #tpu.memory_space<vmem>>, vector<16x128xf32>
      %c0_12 = arith.constant 0 : index
      %c0_13 = arith.constant 0 : index
      %13 = vector.load %arg3[%c0_12, %c0_13] : memref<16x1xf32, #tpu.memory_space<vmem>>, vector<16x1xf32>
      %14 = vector.broadcast %13 : vector<16x1xf32> to vector<16x128xf32>
      %15 = arith.mulf %12, %14 : vector<16x128xf32>
      %16 = arith.truncf %15 : vector<16x128xf32> to vector<16x128xbf16>
      %c0_14 = arith.constant 0 : index
      %c0_15 = arith.constant 0 : index
      %17 = vector.load %arg6[%c0_14, %c0_15] : memref<128x128xbf16, #tpu.memory_space<vmem>>, vector<128x128xbf16>
      %cst_16 = arith.constant dense<0.000000e+00> : vector<16x128xf32>
      %18 = tpu.matmul %16, %17, %cst_16 {dimension_numbers = #tpu.dot_dimension_numbers<[1], [0], [0], [1], [0, 0, 1, 1], [], []>} : vector<16x128xbf16>, vector<128x128xbf16>, vector<16x128xf32> -> vector<16x128xf32>
      %c0_17 = arith.constant 0 : index
      %c0_18 = arith.constant 0 : index
      %19 = vector.load %arg5[%c0_17, %c0_18] : memref<16x128xbf16, #tpu.memory_space<vmem>>, vector<16x128xbf16>
      %c0_19 = arith.constant 0 : index
      %c0_20 = arith.constant 0 : index
      %20 = vector.load %arg7[%c0_19, %c0_20] : memref<128x128xbf16, #tpu.memory_space<vmem>>, vector<128x128xbf16>
      %cst_21 = arith.constant dense<0.000000e+00> : vector<16x128xf32>
      %21 = tpu.matmul %19, %20, %cst_21 {dimension_numbers = #tpu.dot_dimension_numbers<[1], [0], [0], [1], [0, 0, 1, 1], [], []>} : vector<16x128xbf16>, vector<128x128xbf16>, vector<16x128xf32> -> vector<16x128xf32>
      %22 = arith.addf %18, %21 : vector<16x128xf32>
      %c0_22 = arith.constant 0 : index
      %c0_23 = arith.constant 0 : index
      %23 = vector.load %arg8[%c0_22, %c0_23] : memref<1x128xf32, #tpu.memory_space<vmem>>, vector<1x128xf32>
      %24 = vector.broadcast %23 : vector<1x128xf32> to vector<16x128xf32>
      %25 = arith.addf %22, %24 : vector<16x128xf32>
      %cst_24 = arith.constant 0.000000e+00 : f32
      %26 = vector.broadcast %cst_24 : f32 to vector<16x128xf32>
      %27 = arith.maximumf %25, %26 : vector<16x128xf32>
      %28 = arith.truncf %27 : vector<16x128xf32> to vector<16x128xbf16>
      %c0_25 = arith.constant 0 : index
      %c0_26 = arith.constant 0 : index
      %29 = vector.load %arg9[%c0_25, %c0_26] : memref<16x128xbf16, #tpu.memory_space<vmem>>, vector<16x128xbf16>
      tpu.vector_store %arg9[%c0_25, %c0_26], %28 {strides = array<i32>} : memref<16x128xbf16, #tpu.memory_space<vmem>>, vector<16x128xbf16>,
    } else {
    }
    return
  }
  func.func @transform_0(%arg0: i32, %arg1: i32) -> (i32, i32) {
    %c0_i32 = arith.constant 0 : i32
    return %arg0, %arg1 : i32, i32
  }
  func.func @transform_1(%arg0: i32, %arg1: i32) -> (i32, i32) {
    %c0_i32 = arith.constant 0 : i32
    %c0_i32_0 = arith.constant 0 : i32
    return %arg0, %c0_i32 : i32, i32
  }
  func.func @transform_2(%arg0: i32, %arg1: i32) -> (i32, i32) {
    %c0_i32 = arith.constant 0 : i32
    %c0_i32_0 = arith.constant 0 : i32
    return %arg1, %c0_i32 : i32, i32
  }
  func.func @transform_3(%arg0: i32, %arg1: i32) -> (i32, i32) {
    %c0_i32 = arith.constant 0 : i32
    %c0_i32_0 = arith.constant 0 : i32
    return %arg0, %c0_i32 : i32, i32
  }
  func.func @transform_4(%arg0: i32, %arg1: i32) -> (i32, i32) {
    %c0_i32 = arith.constant 0 : i32
    %c0_i32_0 = arith.constant 0 : i32
    %c0_i32_1 = arith.constant 0 : i32
    return %c0_i32, %c0_i32_0 : i32, i32
  }
  func.func @transform_5(%arg0: i32, %arg1: i32) -> (i32, i32) {
    %c0_i32 = arith.constant 0 : i32
    %c0_i32_0 = arith.constant 0 : i32
    %c0_i32_1 = arith.constant 0 : i32
    return %c0_i32, %c0_i32_0 : i32, i32
  }
  func.func @transform_6(%arg0: i32, %arg1: i32) -> (i32, i32) {
    %c0_i32 = arith.constant 0 : i32
    %c0_i32_0 = arith.constant 0 : i32
    %c0_i32_1 = arith.constant 0 : i32
    return %c0_i32, %c0_i32_0 : i32, i32
  }
  func.func @transform_7(%arg0: i32, %arg1: i32) -> (i32, i32) {
    %c0_i32 = arith.constant 0 : i32
    %c0_i32_0 = arith.constant 0 : i32
    return %arg0, %c0_i32 : i32, i32
  }
}

</mosaic_0001>

<bundles_post_ra>
// kernel: tpu_custom_call.1
= control target key start
LH: loop header
LB: loop body
LE: loop exit
PB: predicated region body
PF: predicated region fallthrough
CT: control target
= control target key end

     0   :  { %12 = vsyncpa [#allocation4], 0  ;;  %s634_s0 = inlined_call_operand.vmem [shape: bf16[16,16], index: 0, kind: input, shape index: {}]   ;;  %s635_s1 = inlined_call_operand.vmem [shape: f32[16,1], index: 1, kind: input, shape index: {}]   ;;  %s636_s2 = inlined_call_operand.vmem [shape: bf16[16,128], index: 2, kind: input, shape index: {}]   ;;  %s637_s3 = inlined_call_operand.hbm [shape: bf16[16,128], index: 3, kind: input, shape index: {}]   ;;  %s638_s4 = inlined_call_operand.hbm [shape: bf16[128,128], index: 4, kind: input, shape index: {}]   ;;  %s639_s5 = inlined_call_operand.hbm [shape: bf16[128,128], index: 5, kind: input, shape index: {}]   ;;  %s640_s6 = inlined_call_operand.vmem [shape: f32[1,128], index: 6, kind: input, shape index: {}]   ;;  %s641_s7 = inlined_call_operand.hbm [shape: bf16[16,128], index: 7, kind: output, shape index: {}]  }
   0x1   :  { %13 = vsyncpa [#allocation7], 0 }
   0x2   :  { %14 = vsyncpa [#allocation5], 0  ;;  %s38_s26 = sshll.u32 %s638_s4, 4  ;;  %s548_s27 = smov [#allocation6]   ;;  %s39_s26 = int_to_ptr.hbm [resolvable:$true] %s38_s26 }
   0x3   :  { %s40_s28 = sshll.u32 %s548_s27, 4  ;;  %s25_s8 = sshll.u32 %s637_s3, 4  ;;  %s41_s28 = int_to_ptr.vmem [resolvable:$true] %s40_s28  ;;  %s26_s8 = int_to_ptr.hbm [resolvable:$true] %s25_s8 }
   0x4   :  { %s549_s9 = smov 64   ;;  %s550_s10 = smov 4  }
   0x5   :  { %46 = dma.hbm_to_vmem [thread:$0]  %s39_s26, 1024, %s41_s28, [#allocation7], %s549_s9, %s549_s9, %s550_s10  }
   0x6   :  { %s551_s11 = smov [#allocation3]   ;;  %s51_s4 = sshll.u32 %s639_s5, 4  ;;  %s52_s4 = int_to_ptr.hbm [resolvable:$true] %s51_s4 }
   0x7   :  { %s27_s12 = sshll.u32 %s551_s11, 4  ;;  %s552_s3 = smov [#allocation8]   ;;  %s28_s12 = int_to_ptr.vmem [resolvable:$true] %s27_s12 }
   0x8   :  { %33 = dma.hbm_to_vmem [thread:$0]  %s26_s8, 128, %s28_s12, [#allocation4], %s549_s9, %s549_s9, %s550_s10  }
   0x9   :  { %s53_s15 = sshll.u32 %s552_s3, 4  ;;  %s54_s15 = int_to_ptr.vmem [resolvable:$true] %s53_s15 }
   0xa   :  { %59 = dma.hbm_to_vmem [thread:$0]  %s52_s4, 1024, %s54_s15, [#allocation7], %s549_s9, %s549_s9, %s550_s10  }
   0xb   :  { %542 = dma.done.wait [#allocation4], 128  }
   0xc   :  { %543 = vsyncadd [#allocation4], 4294967168 }
   0xd   :  { %544 = dma.done.wait [#allocation7], 2048  }
   0xe   :  { %545 = vsyncadd [#allocation7], 4294965248  ;;  %v553_v0 = vmov 0   ;;  %v414_v1 = vld [vmem:[%s636_s2] sm:$0xff]  ;;  %vm98_vm0 = vcmask 130048   ;;  %v430_v6 = vld [vmem:[#allocation8 + $0x30] sm:$0xff] }
   0xf   :  { %444 = vset.pattern.permute.xlu0 %v553_v0  ;;  %v125_v2 = vld [vmem:[%s635_s1] sm:$0xff]  ;;  %109 = vmatpush.bf16.msra.mxu0 %v414_v1  ;;  %v421_v7 = vld [vmem:[#allocation6 + $0x30] sm:$0xff]  ;;  %v126_v8 = vld [vmem:[%s635_s1 + $0x8] sm:$0xff]  ;;  %s554_s22 = smov [#allocation9]   ;;  %s322_s26 = sshll.u32 %s641_s7, 4  ;;  %s323_s26 = int_to_ptr.hbm [resolvable:$true] %s322_s26 }
  0x10   :  { %v413_v3 = vld [vmem:[%s634_s0] sm:$0xff]  ;;  %129 = vperm.xlu0 %444, %v125_v2   ;;  %v429_v9 = vld [vmem:[#allocation8 + $0x28] sm:$0xff]  ;;  %v428_v11 = vld [vmem:[#allocation8 + $0x20] sm:$0xff]  ;;  %s320_s23 = sshll.u32 %s554_s22, 4  ;;  %s321_s23 = int_to_ptr.vmem [resolvable:$true] %s320_s23 }
  0x11   :  { %v431_v4 = vld [vmem:[#allocation8 + $0x38] sm:$0xff]  ;;  %v420_v10 = vld [vmem:[#allocation6 + $0x28] sm:$0xff]  ;;  %v419_v12 = vld [vmem:[#allocation6 + $0x20] sm:$0xff] }
  0x12   :  { %v422_v5 = vld [vmem:[#allocation6 + $0x38] sm:$0xff]  ;;  %228 = vmatpush.bf16.msra.mxu1 %v431_v4  ;;  %344 = vmatmul.msk.bf16.vlgmr.msra.gmra.mxu0 %vm98_vm0, %v413_v3  ;;  %v426_v15 = vld [vmem:[#allocation8 + $0x10] sm:$0xff]  ;;  %v425_v17 = vld [vmem:[#allocation8 + $0x8] sm:$0xff] }
  0x13   :  { %290 = vmatpush.bf16.msra.mxu2 %v422_v5  ;;  %v427_v13 = vld [vmem:[#allocation8 + $0x18] sm:$0xff]  ;;  %v417_v16 = vld [vmem:[#allocation6 + $0x10] sm:$0xff]  ;;  %v416_v18 = vld [vmem:[#allocation6 + $0x8] sm:$0xff] }
  0x14   :  { %v418_v14 = vld [vmem:[#allocation6 + $0x18] sm:$0xff]  ;;  %v424_v19 = vld [vmem:[#allocation8] sm:$0xff] }
  0x15   :  { %v415_v20 = vld [vmem:[#allocation6] sm:$0xff]  ;;  %v423_v21 = vld [vmem:[#allocation3] sm:$0xff] }
  0x16   :  { %229 = vmatpush.bf16.msra.mxu1 %v430_v6  ;;  %v445_v32 = vld [vmem:[%s640_s6] ss:$0 sm:$0xff] }
  0x17   :  { %291 = vmatpush.bf16.msra.mxu2 %v421_v7 }
  0x18   :  { %134 = vperm.xlu0 %444, %v126_v8  }
  0x1a   :  { %230 = vmatpush.bf16.msra.mxu1 %v429_v9 }
  0x1b   :  { %292 = vmatpush.bf16.msra.mxu2 %v420_v10 }
  0x1e   :  { %231 = vmatpush.bf16.msra.mxu1 %v428_v11 }
  0x1f   :  { %293 = vmatpush.bf16.msra.mxu2 %v419_v12 }
  0x22   :  { %232 = vmatpush.bf16.msra.mxu1 %v427_v13 }
  0x23   :  { %294 = vmatpush.bf16.msra.mxu2 %v418_v14 }
  0x26   :  { %233 = vmatpush.bf16.msra.mxu1 %v426_v15 }
  0x27   :  { %295 = vmatpush.bf16.msra.mxu2 %v417_v16 }
  0x2a   :  { %234 = vmatpush.bf16.msra.mxu1 %v425_v17 }
  0x2b   :  { %296 = vmatpush.bf16.msra.mxu2 %v416_v18 }
  0x2e   :  { %235 = vmatpush.bf16.msra.mxu1 %v424_v19 }
  0x2f   :  { %297 = vmatpush.bf16.msra.mxu2 %v415_v20 }
  0x31   :  { %236 = vmatmul.bf16.vlgmr.msra.gmra.mxu1 %v423_v21 }
  0x82   :  { %v130_v22 = vpop.permute.xlu0 %129 }
  0x8a   :  { %v135_v24 = vpop.permute.xlu0 %134 }
  0x8f   :  { %v111_v23 = vpop.f32.mrf.mxu0 }
  0x90   :  { %v137_v26 = vmul.f32 %v130_v22, %v111_v23 }
  0x97   :  { %v113_v25 = vpop.f32.mrf.mxu0 }
  0x98   :  { %v138_v27 = vmul.f32 %v135_v24, %v113_v25 }
  0x9a   :  { %v139_v28 = vpack.c.bf16 %v138_v27, %v137_v26 }
  0x9c   :  { %298 = vmatmul.bf16.vlgmr.msra.gmra.mxu2 %v139_v28 }
  0xae   :  { %v237_v29 = vpop.f32.mrf.mxu1 }
  0xb6   :  { %v239_v33 = vpop.f32.mrf.mxu1 }
 0x11f   :  { %v299_v30 = vpop.f32.mrf.mxu2 }
 0x120   :  { %v300_v31 = vadd.f32 %v299_v30, %v237_v29 }
 0x122   :  { %v308_v35 = vadd.f32 %v445_v32, %v300_v31 }
 0x124   :  { %v310_v38 = vmax.f32 %v308_v35, 0.0 }
 0x127   :  { %v301_v34 = vpop.f32.mrf.mxu2 }
 0x128   :  { %v302_v36 = vadd.f32 %v301_v34, %v239_v33 }
 0x12a   :  { %v309_v37 = vadd.f32 %v445_v32, %v302_v36 }
 0x12c   :  { %v311_v39 = vmax.f32 %v309_v37, 0.0 }
 0x12e   :  { %v435_v40 = vpack.c.bf16 %v311_v39, %v310_v38 }
 0x130   :  { %436 = vst [vmem:[#allocation9] sm:$0xff] %v435_v40  }
 0x131   :  { %328 = dma.vmem_to_hbm [thread:$0]  %s321_s23, 128, %s323_s26, [#allocation5], %s549_s9, %s549_s9, %s550_s10  }
 0x132   :  { %546 = dma.done.wait [#allocation5], 128  }
 0x133   :  { %547 = vsyncadd [#allocation5], 4294967168 }
 0x134   :  { %333 = vsyncpa [#allocation4], 1 }
 0x135   :  { %334 = vsyncpa [#allocation7], 1 }
 0x136   :  { %335 = vsyncpa [#allocation5], 1 }

</bundles_post_ra>
